<compile_context>
chip_gen: v5e
topology: v5e:2x2
jax: 0.10.0
libtpu: 0.0.40
codegen_flags: <defaults>
</compile_context>

<pallas_src>
import jax
import jax.numpy as jnp
from jax.experimental import pallas as pl
from jax.experimental.pallas import tpu as pltpu


def _round_up(v, m):
    return ((v + m - 1) // m) * m


# ----------------------------------------------------------------------------
# Kernel: o = x @ W + b   (W stored as (in_dim, out_dim); all logical widths).
# out_dim stays at its logical width; lane padding only exists in vregs/VMEM.
# ----------------------------------------------------------------------------
def _linear_kernel(x_ref, w_ref, b_ref, o_ref):
    # x_ref : (Bblk, K)   input tile
    # w_ref : (K,    N)   weight, transposed once at init
    # b_ref : (1,    N)   bias row
    # o_ref : (Bblk, N)   logical-width output tile
    x = x_ref[...].astype(jnp.float32)   # in-kernel cast; no-op for f32 inputs
    acc = jnp.dot(x, w_ref[...], preferred_element_type=jnp.float32)
    o_ref[...] = (acc + b_ref[...]).astype(o_ref.dtype)


# ----------------------------------------------------------------------------
# One-time parameter preparation (hoisted out of forward). No lane padding.
# ----------------------------------------------------------------------------
def prepare_svr_params(weight, bias):
    """Transpose weight to (in_dim, out_dim) and reshape bias to a (1, out) row.

    Args:
      weight: (output_dim, input_dim) float32  (PyTorch nn.Linear convention)
      bias:   (output_dim,)           float32
    """
    w_t = jnp.asarray(weight, jnp.float32).T          # (in_dim, out_dim)
    b_row = jnp.asarray(bias, jnp.float32)[None, :]   # (1, out_dim)
    return w_t, b_row


# ----------------------------------------------------------------------------
# Forward
# ----------------------------------------------------------------------------
_SMALL_BATCH = 512


def _choose_tile_m(batch):
    # >= ~8 grid steps (both v7x TCs get several tiles), tiles >= 512 rows
    # (amortize per-step pipeline overhead), tiles <= 4096 rows (keep
    # double-buffered VMEM blocks small on every generation).
    t = -(-batch // 8)             # cdiv(batch, 8)
    t = _round_up(t, 512)
    return max(512, min(4096, t))


def svr_forward(x, w_t, b_row, *, tile_m=None):
    """Matches TorchSVR.forward: returns (batch, output_dim) float32."""
    batch, in_dim = x.shape
    k_dim, out_dim = w_t.shape
    assert k_dim == in_dim

    cost = pl.CostEstimate(
        flops=2 * batch * in_dim * out_dim,
        transcendentals=0,
        bytes_accessed=4 * (batch * in_dim + in_dim * out_dim + out_dim
                            + batch * out_dim),
    )
    out_shape = jax.ShapeDtypeStruct((batch, out_dim), jnp.float32)

    if tile_m is None and batch <= _SMALL_BATCH:
        # Small batch: single invocation, whole (unpadded) arrays in VMEM,
        # no grid / pipeline machinery.
        return pl.pallas_call(
            _linear_kernel,
            out_shape=out_shape,
            in_specs=[pl.BlockSpec(memory_space=pltpu.MemorySpace.VMEM)] * 3,
            out_specs=pl.BlockSpec(memory_space=pltpu.MemorySpace.VMEM),
            cost_estimate=cost,
        )(x, w_t, b_row)

    # Large batch: tile the batch dim.  Weight/bias keep a constant block
    # index so they stay VMEM-resident; "parallel" lets v7x's two TensorCores
    # split the grid (ragged last tiles are masked by Pallas on writeback).
    tm = _choose_tile_m(batch) if tile_m is None else tile_m
    grid_m = pl.cdiv(batch, tm)
    # TODO(synk): if xprof shows the output writeback DMA exposed, add
    # pipeline_mode=pl.Buffered(3) to out_specs only (the byte-heavy stream).
    return pl.pallas_call(
        _linear_kernel,
        out_shape=out_shape,
        grid=(grid_m,),
        in_specs=[
            pl.BlockSpec((tm, in_dim), lambda i: (i, 0)),
            pl.BlockSpec((in_dim, out_dim), lambda i: (0, 0)),
            pl.BlockSpec((1, out_dim), lambda i: (0, 0)),
        ],
        out_specs=pl.BlockSpec((tm, out_dim), lambda i: (i, 0)),
        compiler_params=pltpu.CompilerParams(
            dimension_semantics=("parallel",),
            vmem_limit_bytes=32 * 1024 * 1024,
        ),
        cost_estimate=cost,
    )(x, w_t, b_row)


# ----------------------------------------------------------------------------
# Deterministic parameter init (mirrors nn.Linear's U(-1/sqrt(fan_in), ...))
# ----------------------------------------------------------------------------
def init_svr_params(key, input_dim=4, output_dim=4):
    kw, kb = jax.random.split(key)
    bound = 1.0 / jnp.sqrt(jnp.float32(input_dim))
    weight = jax.random.uniform(
        kw, (output_dim, input_dim), jnp.float32, minval=-bound, maxval=bound)
    bias = jax.random.uniform(
        kb, (output_dim,), jnp.float32, minval=-bound, maxval=bound)
    return weight, bias


if __name__ == "__main__":
    key = jax.random.PRNGKey(0)
    k_params, k_small, k_big, k_ragged = jax.random.split(key, 4)

    input_dim, output_dim = 4, 4
    weight, bias = init_svr_params(k_params, input_dim, output_dim)
    # Static transpose done ONCE, outside the forward path.
    w_t, b_row = prepare_svr_params(weight, bias)

    # --- small batch (no-grid VMEM path) ------------------------------------
    batch = 8
    x = jax.random.normal(k_small, (batch, input_dim), jnp.float32)
    out = jax.block_until_ready(svr_forward(x, w_t, b_row))
    ref = x @ weight.T + bias
    assert out.shape == (batch, output_dim)
    assert jnp.allclose(out, ref, atol=1e-5, rtol=1e-5)

    # --- large batch (batch-tiled, "parallel" grid path) ---------------------
    big_batch = 2048
    xb = jax.random.normal(k_big, (big_batch, input_dim), jnp.float32)
    out_b = jax.block_until_ready(svr_forward(xb, w_t, b_row))
    ref_b = xb @ weight.T + bias
    assert out_b.shape == (big_batch, output_dim)
    assert jnp.allclose(out_b, ref_b, atol=1e-5, rtol=1e-5)

    # --- ragged batch (batch % tile_m != 0) through the grid path ------------
    ragged_batch = 1000
    xr = jax.random.normal(k_ragged, (ragged_batch, input_dim), jnp.float32)
    out_r = jax.block_until_ready(svr_forward(xr, w_t, b_row, tile_m=256))
    ref_r = xr @ weight.T + bias
    assert out_r.shape == (ragged_batch, output_dim)
    assert jnp.allclose(out_r, ref_r, atol=1e-5, rtol=1e-5)

    # TODO(synk): epsilon-insensitive loss() is a training-time utility, not
    # part of forward(); it is not implemented as a kernel here.
    print("KERNEL_OK")
</pallas_src>

<mosaic_0001>
module attributes {stable_mosaic.version = 11 : i64} {
  func.func @_linear_kernel(%arg0: memref<8x4xf32, #tpu.memory_space<vmem>>, %arg1: memref<4x4xf32, #tpu.memory_space<vmem>>, %arg2: memref<1x4xf32, #tpu.memory_space<vmem>>, %arg3: memref<8x4xf32, #tpu.memory_space<vmem>>) attributes {dimension_semantics = [], scalar_prefetch = 0 : i64, scratch_operands = 0 : i64, tpu.core_type = #tpu.core_type<tc>} {
    %c0 = arith.constant 0 : index
    %c0_0 = arith.constant 0 : index
    %0 = vector.load %arg0[%c0, %c0_0] : memref<8x4xf32, #tpu.memory_space<vmem>>, vector<8x4xf32>
    %c0_1 = arith.constant 0 : index
    %c0_2 = arith.constant 0 : index
    %1 = vector.load %arg1[%c0_1, %c0_2] : memref<4x4xf32, #tpu.memory_space<vmem>>, vector<4x4xf32>
    %cst = arith.constant dense<0.000000e+00> : vector<8x4xf32>
    %2 = tpu.matmul %0, %1, %cst {dimension_numbers = #tpu.dot_dimension_numbers<[1], [0], [0], [1], [0, 0, 1, 1], [], []>} : vector<8x4xf32>, vector<4x4xf32>, vector<8x4xf32> -> vector<8x4xf32>
    %c0_3 = arith.constant 0 : index
    %c0_4 = arith.constant 0 : index
    %3 = vector.load %arg2[%c0_3, %c0_4] : memref<1x4xf32, #tpu.memory_space<vmem>>, vector<1x4xf32>
    %4 = vector.broadcast %3 : vector<1x4xf32> to vector<8x4xf32>
    %5 = arith.addf %2, %4 : vector<8x4xf32>
    %c0_5 = arith.constant 0 : index
    %c0_6 = arith.constant 0 : index
    %6 = vector.load %arg3[%c0_5, %c0_6] : memref<8x4xf32, #tpu.memory_space<vmem>>, vector<8x4xf32>
    tpu.vector_store %arg3[%c0_5, %c0_6], %5 {strides = array<i32>} : memref<8x4xf32, #tpu.memory_space<vmem>>, vector<8x4xf32>,
    return
  }
}

</mosaic_0001>

<bundles_post_ra>
// kernel: tpu_custom_call.1
= control target key start
LH: loop header
LB: loop body
LE: loop exit
PB: predicated region body
PF: predicated region fallthrough
CT: control target
= control target key end

     0   :  { %vm24_vm0 = vcmask 1043456   ;;  %vm20_vm1 = vcmask 31744   ;;  %s88_s1 = inlined_call_operand.vmem [shape: f32[4,4], index: 1, kind: input, shape index: {}]   ;;  %s89_s0 = inlined_call_operand.vmem [shape: f32[8,4], index: 0, kind: input, shape index: {}]   ;;  %s90_s2 = inlined_call_operand.vmem [shape: f32[1,4], index: 2, kind: input, shape index: {}]   ;;  %s91_s3 = inlined_call_operand.vmem [shape: f32[8,4], index: 3, kind: output, shape index: {}]  }
   0x1   :  { %v15_v0 = vld [vmem:[%s88_s1] sm:$0xf] }
   0x2   :  { %v14_v1 = vld [vmem:[%s89_s0] sm:$0xff]  ;;  %53 = vmatpush.msk.msra.mxu0 %vm24_vm0, %v15_v0 }
   0x3   :  { %54 = vmatmul.msk.f32.vlgmr.msra.gmra.mxu0 %vm20_vm1, %v14_v1  ;;  %v55_v2 = vld [vmem:[%s90_s2] ss:$0 sm:$0xff] }
  0x80   :  { %v45_v3 = vpop.f32.mrf.mxu0 }
  0x81   :  { %v46_v4 = vadd.f32 %v55_v2, %v45_v3 }
  0x83   :  { %48 = vst.msk [vmem:[%s91_s3] sm:$0xff] %vm20_vm1, %v46_v4 }

</bundles_post_ra>
